<compile_context>
chip_gen: v5e
topology: v5e:2x2
jax: 0.10.0
libtpu: 0.0.40
codegen_flags: <defaults>
</compile_context>

<pallas_src>
import functools

import jax
import jax.numpy as jnp
from jax import lax
from jax.experimental import pallas as pl
from jax.experimental.pallas import tpu as pltpu

EPS = 1e-5

# Contract x's feature axis (1) against W's "in" axis (1); W stored (out, in) as in PyTorch.
_DN_X_WT = (((1,), (1,)), ((), ()))


def residual_block_kernel(x_ref, w1_ref, w2_ref, p_ref, o_ref):
    """p_ref rows: 0 = gamma1, 1 = beta1, 2 = gamma2, 3 = beta2 (each (1, F))."""
    x = x_ref[...].astype(jnp.float32)

    # ---- fc[0]: Linear (bias omitted: cancelled by the training-mode BN that follows) ----
    h = lax.dot_general(x, w1_ref[...], dimension_numbers=_DN_X_WT,
                        preferred_element_type=jnp.float32)

    # ---- fc[1]: BatchNorm1d (training mode) folded into a single scale/shift FMA ----
    mean1 = jnp.mean(h, axis=0, keepdims=True)
    var1 = jnp.mean(h * h, axis=0, keepdims=True) - mean1 * mean1
    scale1 = p_ref[0:1, :] * lax.rsqrt(var1 + EPS)
    shift1 = p_ref[1:2, :] - mean1 * scale1

    # ---- fc[2]: ReLU fused with BN apply ----
    h = jnp.maximum(h * scale1 + shift1, 0.0)

    # ---- fc[3]: Linear (bias again cancelled by BN) ----
    h2 = lax.dot_general(h, w2_ref[...], dimension_numbers=_DN_X_WT,
                         preferred_element_type=jnp.float32)

    # ---- fc[4]: BatchNorm1d, folded ----
    mean2 = jnp.mean(h2, axis=0, keepdims=True)
    var2 = jnp.mean(h2 * h2, axis=0, keepdims=True) - mean2 * mean2
    scale2 = p_ref[2:3, :] * lax.rsqrt(var2 + EPS)
    shift2 = p_ref[3:4, :] - mean2 * scale2

    # ---- residual add + outer ReLU ----
    o_ref[...] = jnp.maximum(x + h2 * scale2 + shift2, 0.0).astype(o_ref.dtype)


@jax.jit
def residual_block(x, w1, b1, g1, be1, w2, b2, g2, be2):
    """x: (B, F) f32.  w1/w2: (F, F) as stored by nn.Linear (out, in).  Others: (F,).

    b1/b2 are accepted for API parity with the PyTorch module but are mathematically
    cancelled by the training-mode BatchNorm mean subtraction, so they never reach
    the kernel.
    """
    del b1, b2  # cancelled exactly by BN mean subtraction (training mode)
    B, F = x.shape

    # Pack the four per-feature BN vectors into one (4, F) array -> one aligned DMA.
    params = jnp.stack([g1, be1, g2, be2], axis=0)

    # Explicit VMEM budget: 2 weights + a few (B,F) activations + params, x2 headroom,
    # floored at the default 32 MiB and capped below v7x's 64 MiB physical VMEM.
    vmem_bytes = 4 * (2 * F * F + 6 * B * F + 8 * F)
    vmem_limit = int(min(max(2 * vmem_bytes, 32 * 1024 * 1024), 60 * 1024 * 1024))

    vmem = pl.BlockSpec(memory_space=pltpu.MemorySpace.VMEM)
    return pl.pallas_call(
        residual_block_kernel,
        out_shape=jax.ShapeDtypeStruct((B, F), x.dtype),
        in_specs=[vmem, vmem, vmem, vmem],
        out_specs=vmem,
        input_output_aliases={0: 0},  # x and output share shape/dtype; x dead after kernel
        compiler_params=pltpu.CompilerParams(vmem_limit_bytes=vmem_limit),
    )(x, w1, w2, params)


def residual_block_ref(x, w1, b1, g1, be1, w2, b2, g2, be2):
    """Pure-JAX reference mirroring PyTorch semantics (training-mode BN, biases kept)."""
    def bn(h, g, be):
        m = h.mean(axis=0, keepdims=True)
        v = ((h - m) ** 2).mean(axis=0, keepdims=True)
        return (h - m) / jnp.sqrt(v + EPS) * g + be

    h = x @ w1.T + b1
    h = jnp.maximum(bn(h, g1, be1), 0.0)
    h = h @ w2.T + b2
    h = bn(h, g2, be2)
    return jnp.maximum(x + h, 0.0)


if __name__ == "__main__":
    B, F = 8, 128  # batch, in_features (small test shape)

    key = jax.random.PRNGKey(0)
    kx, kw1, kb1, kw2, kb2, kg1, kbe1, kg2, kbe2 = jax.random.split(key, 9)

    x = jax.random.normal(kx, (B, F), dtype=jnp.float32)

    # Synthetic parameters with nn.Linear / nn.BatchNorm1d shapes.
    w1 = 0.1 * jax.random.normal(kw1, (F, F), dtype=jnp.float32)
    b1 = 0.1 * jax.random.normal(kb1, (F,), dtype=jnp.float32)
    w2 = 0.1 * jax.random.normal(kw2, (F, F), dtype=jnp.float32)
    b2 = 0.1 * jax.random.normal(kb2, (F,), dtype=jnp.float32)
    g1 = 1.0 + 0.05 * jax.random.normal(kg1, (F,), dtype=jnp.float32)
    be1 = 0.05 * jax.random.normal(kbe1, (F,), dtype=jnp.float32)
    g2 = 1.0 + 0.05 * jax.random.normal(kg2, (F,), dtype=jnp.float32)
    be2 = 0.05 * jax.random.normal(kbe2, (F,), dtype=jnp.float32)

    out = residual_block(x, w1, b1, g1, be1, w2, b2, g2, be2)
    out = jax.block_until_ready(out)

    ref = residual_block_ref(x, w1, b1, g1, be1, w2, b2, g2, be2)
    assert out.shape == (B, F)
    err = float(jnp.max(jnp.abs(out - ref)))
    assert jnp.allclose(out, ref, atol=2e-4, rtol=2e-4), err

    print("KERNEL_OK")
</pallas_src>

<mosaic_0001>
module attributes {stable_mosaic.version = 11 : i64} {
  func.func @residual_block_kernel(%arg0: memref<8x128xf32, #tpu.memory_space<vmem>>, %arg1: memref<128x128xf32, #tpu.memory_space<vmem>>, %arg2: memref<128x128xf32, #tpu.memory_space<vmem>>, %arg3: memref<4x128xf32, #tpu.memory_space<vmem>>, %arg4: memref<8x128xf32, #tpu.memory_space<vmem>>) attributes {dimension_semantics = [], scalar_prefetch = 0 : i64, scratch_operands = 0 : i64, tpu.core_type = #tpu.core_type<tc>} {
    %c0 = arith.constant 0 : index
    %c0_0 = arith.constant 0 : index
    %0 = vector.load %arg0[%c0, %c0_0] : memref<8x128xf32, #tpu.memory_space<vmem>>, vector<8x128xf32>
    %c0_1 = arith.constant 0 : index
    %c0_2 = arith.constant 0 : index
    %1 = vector.load %arg1[%c0_1, %c0_2] : memref<128x128xf32, #tpu.memory_space<vmem>>, vector<128x128xf32>
    %cst = arith.constant dense<0.000000e+00> : vector<8x128xf32>
    %2 = tpu.matmul %0, %1, %cst {dimension_numbers = #tpu.dot_dimension_numbers<[1], [1], [0], [0], [0, 0, 1, 0], [], []>} : vector<8x128xf32>, vector<128x128xf32>, vector<8x128xf32> -> vector<8x128xf32>
    %cst_3 = arith.constant dense<0.000000e+00> : vector<128xf32>
    %3 = vector.multi_reduction <add>, %2, %cst_3 [0] : vector<8x128xf32> to vector<128xf32>
    %4 = vector.shape_cast %3 : vector<128xf32> to vector<1x128xf32>
    %cst_4 = arith.constant 8.000000e+00 : f32
    %5 = vector.broadcast %cst_4 : f32 to vector<1x128xf32>
    %6 = arith.divf %4, %5 : vector<1x128xf32>
    %7 = arith.mulf %2, %2 : vector<8x128xf32>
    %cst_5 = arith.constant dense<0.000000e+00> : vector<128xf32>
    %8 = vector.multi_reduction <add>, %7, %cst_5 [0] : vector<8x128xf32> to vector<128xf32>
    %9 = vector.shape_cast %8 : vector<128xf32> to vector<1x128xf32>
    %cst_6 = arith.constant 8.000000e+00 : f32
    %10 = vector.broadcast %cst_6 : f32 to vector<1x128xf32>
    %11 = arith.divf %9, %10 : vector<1x128xf32>
    %12 = arith.mulf %6, %6 : vector<1x128xf32>
    %13 = arith.subf %11, %12 : vector<1x128xf32>
    %c0_7 = arith.constant 0 : index
    %c0_8 = arith.constant 0 : index
    %14 = vector.load %arg3[%c0_7, %c0_8] : memref<4x128xf32, #tpu.memory_space<vmem>>, vector<1x128xf32>
    %cst_9 = arith.constant 9.99999974E-6 : f32
    %15 = vector.broadcast %cst_9 : f32 to vector<1x128xf32>
    %16 = arith.addf %13, %15 : vector<1x128xf32>
    %17 = math.rsqrt %16 : vector<1x128xf32>
    %18 = arith.mulf %14, %17 : vector<1x128xf32>
    %c1 = arith.constant 1 : index
    %c0_10 = arith.constant 0 : index
    %19 = vector.load %arg3[%c1, %c0_10] : memref<4x128xf32, #tpu.memory_space<vmem>>, vector<1x128xf32>
    %20 = arith.mulf %6, %18 : vector<1x128xf32>
    %21 = arith.subf %19, %20 : vector<1x128xf32>
    %22 = vector.broadcast %18 : vector<1x128xf32> to vector<8x128xf32>
    %23 = arith.mulf %2, %22 : vector<8x128xf32>
    %24 = vector.broadcast %21 : vector<1x128xf32> to vector<8x128xf32>
    %25 = arith.addf %23, %24 : vector<8x128xf32>
    %cst_11 = arith.constant 0.000000e+00 : f32
    %26 = vector.broadcast %cst_11 : f32 to vector<8x128xf32>
    %27 = arith.maximumf %25, %26 : vector<8x128xf32>
    %c0_12 = arith.constant 0 : index
    %c0_13 = arith.constant 0 : index
    %28 = vector.load %arg2[%c0_12, %c0_13] : memref<128x128xf32, #tpu.memory_space<vmem>>, vector<128x128xf32>
    %cst_14 = arith.constant dense<0.000000e+00> : vector<8x128xf32>
    %29 = tpu.matmul %27, %28, %cst_14 {dimension_numbers = #tpu.dot_dimension_numbers<[1], [1], [0], [0], [0, 0, 1, 0], [], []>} : vector<8x128xf32>, vector<128x128xf32>, vector<8x128xf32> -> vector<8x128xf32>
    %cst_15 = arith.constant dense<0.000000e+00> : vector<128xf32>
    %30 = vector.multi_reduction <add>, %29, %cst_15 [0] : vector<8x128xf32> to vector<128xf32>
    %31 = vector.shape_cast %30 : vector<128xf32> to vector<1x128xf32>
    %cst_16 = arith.constant 8.000000e+00 : f32
    %32 = vector.broadcast %cst_16 : f32 to vector<1x128xf32>
    %33 = arith.divf %31, %32 : vector<1x128xf32>
    %34 = arith.mulf %29, %29 : vector<8x128xf32>
    %cst_17 = arith.constant dense<0.000000e+00> : vector<128xf32>
    %35 = vector.multi_reduction <add>, %34, %cst_17 [0] : vector<8x128xf32> to vector<128xf32>
    %36 = vector.shape_cast %35 : vector<128xf32> to vector<1x128xf32>
    %cst_18 = arith.constant 8.000000e+00 : f32
    %37 = vector.broadcast %cst_18 : f32 to vector<1x128xf32>
    %38 = arith.divf %36, %37 : vector<1x128xf32>
    %39 = arith.mulf %33, %33 : vector<1x128xf32>
    %40 = arith.subf %38, %39 : vector<1x128xf32>
    %c2 = arith.constant 2 : index
    %c0_19 = arith.constant 0 : index
    %41 = vector.load %arg3[%c2, %c0_19] : memref<4x128xf32, #tpu.memory_space<vmem>>, vector<1x128xf32>
    %cst_20 = arith.constant 9.99999974E-6 : f32
    %42 = vector.broadcast %cst_20 : f32 to vector<1x128xf32>
    %43 = arith.addf %40, %42 : vector<1x128xf32>
    %44 = math.rsqrt %43 : vector<1x128xf32>
    %45 = arith.mulf %41, %44 : vector<1x128xf32>
    %c3 = arith.constant 3 : index
    %c0_21 = arith.constant 0 : index
    %46 = vector.load %arg3[%c3, %c0_21] : memref<4x128xf32, #tpu.memory_space<vmem>>, vector<1x128xf32>
    %47 = arith.mulf %33, %45 : vector<1x128xf32>
    %48 = arith.subf %46, %47 : vector<1x128xf32>
    %49 = vector.broadcast %45 : vector<1x128xf32> to vector<8x128xf32>
    %50 = arith.mulf %29, %49 : vector<8x128xf32>
    %51 = arith.addf %0, %50 : vector<8x128xf32>
    %52 = vector.broadcast %48 : vector<1x128xf32> to vector<8x128xf32>
    %53 = arith.addf %51, %52 : vector<8x128xf32>
    %cst_22 = arith.constant 0.000000e+00 : f32
    %54 = vector.broadcast %cst_22 : f32 to vector<8x128xf32>
    %55 = arith.maximumf %53, %54 : vector<8x128xf32>
    %c0_23 = arith.constant 0 : index
    %c0_24 = arith.constant 0 : index
    %56 = vector.load %arg4[%c0_23, %c0_24] : memref<8x128xf32, #tpu.memory_space<vmem>>, vector<8x128xf32>
    tpu.vector_store %arg4[%c0_23, %c0_24], %55 {strides = array<i32>} : memref<8x128xf32, #tpu.memory_space<vmem>>, vector<8x128xf32>,
    return
  }
}

</mosaic_0001>

<bundles_post_ra>
// kernel: residual_block.1
= control target key start
LH: loop header
LB: loop body
LE: loop exit
PB: predicated region body
PF: predicated region fallthrough
CT: control target
= control target key end

     0   :  { %9 = vsyncpa [#allocation3], 0  ;;  %s414_s0 = inlined_call_operand.hbm [shape: f32[8,128], index: 0, kind: input, shape index: {}, may-alias: {0,4}]   ;;  %s415_s1 = inlined_call_operand.hbm [shape: f32[128,128], index: 1, kind: input, shape index: {}]   ;;  %s416_s2 = inlined_call_operand.hbm [shape: f32[128,128], index: 2, kind: input, shape index: {}]   ;;  %s417_s3 = inlined_call_operand.vmem [shape: f32[4,128], index: 3, kind: input, shape index: {}]   ;;  %s418_s4 = inlined_call_operand.hbm [shape: f32[8,128], index: 4, kind: output, shape index: {}, may-alias: {0,4}]  }
   0x1   :  { %10 = vsyncpa [#allocation6], 0  ;;  %s27_s17 = sshll.u32 %s415_s1, 4  ;;  %s28_s17 = int_to_ptr.hbm [resolvable:$true] %s27_s17 }
   0x2   :  { %11 = vsyncpa [#allocation4], 0  ;;  %s354_s18 = smov [#allocation5]   ;;  %s17_s22 = sshll.u32 %s414_s0, 4  ;;  %s18_s22 = int_to_ptr.hbm [resolvable:$true] %s17_s22 }
   0x3   :  { %s29_s19 = sshll.u32 %s354_s18, 4  ;;  %s355_s23 = smov 128   ;;  %s30_s19 = int_to_ptr.vmem [resolvable:$true] %s29_s19 }
   0x4   :  { %s356_s24 = smov 8   ;;  %s357_s25 = smov [#allocation2]  }
   0x5   :  { %35 = dma.hbm_to_vmem [thread:$0]  %s28_s17, 2048, %s30_s19, [#allocation6], %s355_s23, %s355_s23, %s356_s24  }
   0x6   :  { %s19_s26 = sshll.u32 %s357_s25, 4  ;;  %s40_s29 = sshll.u32 %s416_s2, 4  ;;  %s20_s26 = int_to_ptr.vmem [resolvable:$true] %s19_s26  ;;  %s41_s29 = int_to_ptr.hbm [resolvable:$true] %s40_s29 }
   0x7   :  { %22 = dma.hbm_to_vmem [thread:$0]  %s18_s22, 128, %s20_s26, [#allocation3]  }
   0x8   :  { %s358_s1 = smov [#allocation7]  }
   0x9   :  { %s42_s30 = sshll.u32 %s358_s1, 4  ;;  %s43_s30 = int_to_ptr.vmem [resolvable:$true] %s42_s30 }
   0xa   :  { %48 = dma.hbm_to_vmem [thread:$0]  %s41_s29, 2048, %s43_s30, [#allocation6], %s355_s23, %s355_s23, %s356_s24  }
   0xb   :  { %348 = dma.done.wait [#allocation3], 128  }
   0xc   :  { %349 = vsyncadd [#allocation3], 4294967168 }
   0xd   :  { %350 = dma.done.wait [#allocation6], 4096  }
   0xe   :  { %351 = vsyncadd [#allocation6], 4294963200  ;;  %v79_v0 = vld [vmem:[#allocation5 + $0x78] sm:$0xff]  ;;  %v78_v1 = vld [vmem:[#allocation5 + $0x70] sm:$0xff]  ;;  %v359_v25 = vmov 8.0   ;;  %s360_s11 = smov [#allocation8]  }
   0xf   :  { %80 = vmatpush.xpose.msra.mxu0 %v79_v0  ;;  %v77_v2 = vld [vmem:[#allocation5 + $0x68] sm:$0xff]  ;;  %v76_v3 = vld [vmem:[#allocation5 + $0x60] sm:$0xff]  ;;  %v75_v4 = vld [vmem:[#allocation5 + $0x58] sm:$0xff]  ;;  %246 = vrcp.f32 %v359_v25  ;;  %s226_s12 = sshll.u32 %s360_s11, 4  ;;  %s228_s15 = sshll.u32 %s418_s4, 4  ;;  %s227_s12 = int_to_ptr.vmem [resolvable:$true] %s226_s12  ;;  %s229_s15 = int_to_ptr.hbm [resolvable:$true] %s228_s15 }
  0x10   :  { %v74_v5 = vld [vmem:[#allocation5 + $0x50] sm:$0xff]  ;;  %v73_v6 = vld [vmem:[#allocation5 + $0x48] sm:$0xff]  ;;  %v72_v7 = vld [vmem:[#allocation5 + $0x40] sm:$0xff] }
  0x11   :  { %v71_v8 = vld [vmem:[#allocation5 + $0x38] sm:$0xff]  ;;  %v70_v10 = vld [vmem:[#allocation5 + $0x30] sm:$0xff]  ;;  %v69_v12 = vld [vmem:[#allocation5 + $0x28] sm:$0xff] }
  0x12   :  { %v160_v9 = vld [vmem:[#allocation7 + $0x78] sm:$0xff]  ;;  %v159_v11 = vld [vmem:[#allocation7 + $0x70] sm:$0xff]  ;;  %v158_v13 = vld [vmem:[#allocation7 + $0x68] sm:$0xff] }
  0x13   :  { %81 = vmatpush.xpose.msra.mxu0 %v78_v1  ;;  %161 = vmatpush.xpose.msra.mxu1 %v160_v9  ;;  %v68_v14 = vld [vmem:[#allocation5 + $0x20] sm:$0xff]  ;;  %v67_v15 = vld [vmem:[#allocation5 + $0x18] sm:$0xff]  ;;  %v66_v16 = vld [vmem:[#allocation5 + $0x10] sm:$0xff] }
  0x14   :  { %v65_v17 = vld [vmem:[#allocation5 + $0x8] sm:$0xff]  ;;  %v64_v18 = vld [vmem:[#allocation5] sm:$0xff]  ;;  %v395_v19 = vld [vmem:[#allocation2] sm:$0xff] }
  0x15   :  { %v157_v20 = vld [vmem:[#allocation7 + $0x60] sm:$0xff]  ;;  %v156_v21 = vld [vmem:[#allocation7 + $0x58] sm:$0xff]  ;;  %v155_v22 = vld [vmem:[#allocation7 + $0x50] sm:$0xff]  ;;  %v247_v27 = vpop.eup %246 }
  0x16   :  { %v154_v23 = vld [vmem:[#allocation7 + $0x48] sm:$0xff]  ;;  %v153_v24 = vld [vmem:[#allocation7 + $0x40] sm:$0xff]  ;;  %v152_v26 = vld [vmem:[#allocation7 + $0x38] sm:$0xff]  ;;  %v107_v29 = vmul.f32 8.0, %v247_v27  ;;  %vm111_vm0 = vweird.f32 %v247_v27 }
  0x17   :  { %82 = vmatpush.xpose.msra.mxu0 %v77_v2  ;;  %162 = vmatpush.xpose.msra.mxu1 %v159_v11  ;;  %v151_v28 = vld [vmem:[#allocation7 + $0x30] sm:$0xff]  ;;  %v150_v30 = vld [vmem:[#allocation7 + $0x28] sm:$0xff]  ;;  %v149_v32 = vld [vmem:[#allocation7 + $0x20] sm:$0xff] }
  0x18   :  { %v108_v31 = vsub.f32 1.0, %v107_v29  ;;  %v148_v39 = vld [vmem:[#allocation7 + $0x18] sm:$0xff]  ;;  %v147_v45 = vld [vmem:[#allocation7 + $0x10] sm:$0xff]  ;;  %v146_v51 = vld [vmem:[#allocation7 + $0x8] sm:$0xff] }
  0x19   :  { %v145_v54 = vld [vmem:[#allocation7] sm:$0xff]  ;;  %v124_v0 = vld [vmem:[%s417_s3] sm:$0x1] }
  0x1a   :  { %v109_v36 = vmul.f32 %v247_v27, %v108_v31 }
  0x1b   :  { %83 = vmatpush.xpose.msra.mxu0 %v76_v3  ;;  %163 = vmatpush.xpose.msra.mxu1 %v158_v13 }
  0x1c   :  { %v110_v42 = vadd.f32 %v247_v27, %v109_v36 }
  0x1e   :  { %v112_v48 = vsel %vm111_vm0, %v247_v27, %v110_v42 }
  0x1f   :  { %84 = vmatpush.xpose.msra.mxu0 %v75_v4  ;;  %164 = vmatpush.xpose.msra.mxu1 %v157_v20  ;;  %v137_v4 = vld [vmem:[%s417_s3 + $0x1] sm:$0x1] }
  0x23   :  { %85 = vmatpush.xpose.msra.mxu0 %v74_v5  ;;  %165 = vmatpush.xpose.msra.mxu1 %v156_v21 }
  0x27   :  { %86 = vmatpush.xpose.msra.mxu0 %v73_v6  ;;  %166 = vmatpush.xpose.msra.mxu1 %v155_v22 }
  0x2b   :  { %87 = vmatpush.xpose.msra.mxu0 %v72_v7  ;;  %167 = vmatpush.xpose.msra.mxu1 %v154_v23 }
  0x2f   :  { %88 = vmatpush.xpose.msra.mxu0 %v71_v8  ;;  %168 = vmatpush.xpose.msra.mxu1 %v153_v24 }
  0x33   :  { %89 = vmatpush.xpose.msra.mxu0 %v70_v10  ;;  %169 = vmatpush.xpose.msra.mxu1 %v152_v26 }
  0x37   :  { %90 = vmatpush.xpose.msra.mxu0 %v69_v12  ;;  %170 = vmatpush.xpose.msra.mxu1 %v151_v28 }
  0x3b   :  { %91 = vmatpush.xpose.msra.mxu0 %v68_v14  ;;  %171 = vmatpush.xpose.msra.mxu1 %v150_v30 }
  0x3f   :  { %92 = vmatpush.xpose.msra.mxu0 %v67_v15  ;;  %172 = vmatpush.xpose.msra.mxu1 %v149_v32 }
  0x43   :  { %93 = vmatpush.xpose.msra.mxu0 %v66_v16  ;;  %173 = vmatpush.xpose.msra.mxu1 %v148_v39 }
  0x47   :  { %94 = vmatpush.xpose.msra.mxu0 %v65_v17  ;;  %174 = vmatpush.xpose.msra.mxu1 %v147_v45 }
  0x4b   :  { %95 = vmatpush.xpose.msra.mxu0 %v64_v18  ;;  %175 = vmatpush.xpose.msra.mxu1 %v146_v51 }
  0x4e   :  { %96 = vmatmul.f32.vlgmr.msra.gmra.mxu0 %v395_v19 }
  0x4f   :  { %176 = vmatpush.xpose.msra.mxu1 %v145_v54 }
  0xcb   :  { %v97_v33 = vpop.f32.mrf.mxu0 }
  0xcc   :  { %v100_v34 = vrot.slane %v97_v33, 4  ;;  %v114_v35 = vmul.f32 %v97_v33, %v97_v33 }
  0xce   :  { %v101_v37 = vadd.f32 %v100_v34, %v97_v33  ;;  %v115_v38 = vrot.slane %v114_v35, 4 }
  0xd0   :  { %v102_v40 = vrot.slane %v101_v37, 2  ;;  %v116_v41 = vadd.f32 %v115_v38, %v114_v35 }
  0xd2   :  { %v103_v43 = vadd.f32 %v102_v40, %v101_v37  ;;  %v117_v44 = vrot.slane %v116_v41, 2  ;;  %v198_v37 = vld [vmem:[%s417_s3 + $0x2] sm:$0x1] }
  0xd4   :  { %v104_v46 = vrot.slane %v103_v43, 1  ;;  %v118_v47 = vadd.f32 %v117_v44, %v116_v41  ;;  %v211_v41 = vld [vmem:[%s417_s3 + $0x3] sm:$0x1] }
  0xd6   :  { %v105_v49 = vadd.f32 %v104_v46, %v103_v43  ;;  %v119_v50 = vrot.slane %v118_v47, 1 }
  0xd8   :  { %v113_v52 = vmul.f32 %v112_v48, %v105_v49  ;;  %v120_v53 = vadd.f32 %v119_v50, %v118_v47 }
  0xda   :  { %v121_v55 = vmul.f32 %v120_v53, %v112_v48  ;;  %v122_v56 = vmul.f32 %v113_v52, %v113_v52 }
  0xdc   :  { %v123_v57 = vsub.f32 %v121_v55, %v122_v56 }
  0xde   :  { %v125_v58 = vadd.f32 1e-05, %v123_v57 }
  0xe0   :  { %248 = vrsqrt.f32 %v125_v58  ;;  %vm132_vm2 = vweird.f32 %v125_v58 }
  0xe6   :  { %v249_v59 = vpop.eup %248 }
  0xe7   :  { %v127_v60 = vmul.f32 %v249_v59, %v125_v58  ;;  %vm133_vm1 = vweird.f32 %v249_v59 }
  0xe8   :  { %vm134_vm3 = vmor %vm132_vm2, %vm133_vm1 }
  0xe9   :  { %v128_v61 = vmul.f32 %v249_v59, %v127_v60 }
  0xeb   :  { %v129_v62 = vmul.f32 0.5, %v128_v61 }
  0xed   :  { %v130_v63 = vsub.f32 1.5, %v129_v62 }
  0xef   :  { %v131_v1 = vmul.f32 %v249_v59, %v130_v63 }
  0xf1   :  { %v135_v2 = vsel %vm134_vm3, %v249_v59, %v131_v1 }
  0xf2   :  { %v136_v3 = vmul.f32 %v135_v2, %v124_v0 }
  0xf4   :  { %v140_v5 = vperm.slane %v136_v3, 0  ;;  %v138_v6 = vmul.f32 %v136_v3, %v113_v52 }
  0xf6   :  { %v139_v7 = vsub.f32 %v137_v4, %v138_v6  ;;  %v141_v8 = vmul.f32 %v140_v5, %v97_v33 }
  0xf8   :  { %v142_v9 = vperm.slane %v139_v7, 0 }
  0xfa   :  { %v143_v10 = vadd.f32 %v142_v9, %v141_v8 }
  0xfc   :  { %v144_v11 = vmax.f32 %v143_v10, 0.0 }
  0xfe   :  { %177 = vmatmul.f32.vlgmr.msra.gmra.mxu1 %v144_v11 }
 0x17b   :  { %v178_v12 = vpop.f32.mrf.mxu1 }
 0x17c   :  { %v181_v13 = vrot.slane %v178_v12, 4  ;;  %v188_v14 = vmul.f32 %v178_v12, %v178_v12 }
 0x17e   :  { %v182_v15 = vadd.f32 %v181_v13, %v178_v12  ;;  %v189_v16 = vrot.slane %v188_v14, 4 }
 0x180   :  { %v183_v17 = vrot.slane %v182_v15, 2  ;;  %v190_v18 = vadd.f32 %v189_v16, %v188_v14 }
 0x182   :  { %v184_v20 = vadd.f32 %v183_v17, %v182_v15  ;;  %v191_v21 = vrot.slane %v190_v18, 2 }
 0x184   :  { %v185_v22 = vrot.slane %v184_v20, 1  ;;  %v192_v23 = vadd.f32 %v191_v21, %v190_v18 }
 0x186   :  { %v186_v24 = vadd.f32 %v185_v22, %v184_v20  ;;  %v193_v25 = vrot.slane %v192_v23, 1 }
 0x188   :  { %v187_v26 = vmul.f32 %v186_v24, %v112_v48  ;;  %v194_v27 = vadd.f32 %v193_v25, %v192_v23 }
 0x18a   :  { %v195_v28 = vmul.f32 %v194_v27, %v112_v48  ;;  %v196_v29 = vmul.f32 %v187_v26, %v187_v26 }
 0x18c   :  { %v197_v30 = vsub.f32 %v195_v28, %v196_v29 }
 0x18e   :  { %v199_v31 = vadd.f32 1e-05, %v197_v30 }
 0x190   :  { %250 = vrsqrt.f32 %v199_v31  ;;  %vm206_vm5 = vweird.f32 %v199_v31 }
 0x196   :  { %v251_v32 = vpop.eup %250 }
 0x197   :  { %v201_v33 = vmul.f32 %v251_v32, %v199_v31  ;;  %vm207_vm4 = vweird.f32 %v251_v32 }
 0x198   :  { %vm208_vm6 = vmor %vm206_vm5, %vm207_vm4 }
 0x199   :  { %v202_v34 = vmul.f32 %v251_v32, %v201_v33 }
 0x19b   :  { %v203_v35 = vmul.f32 0.5, %v202_v34 }
 0x19d   :  { %v204_v36 = vsub.f32 1.5, %v203_v35 }
 0x19f   :  { %v205_v38 = vmul.f32 %v251_v32, %v204_v36 }
 0x1a1   :  { %v209_v39 = vsel %vm208_vm6, %v251_v32, %v205_v38 }
 0x1a2   :  { %v210_v40 = vmul.f32 %v209_v39, %v198_v37 }
 0x1a4   :  { %v212_v42 = vmul.f32 %v210_v40, %v187_v26  ;;  %v214_v43 = vperm.slane %v210_v40, 0 }
 0x1a6   :  { %v215_v44 = vmul.f32 %v214_v43, %v178_v12  ;;  %v213_v45 = vsub.f32 %v211_v41, %v212_v42 }
 0x1a8   :  { %v216_v46 = vadd.f32 %v215_v44, %v395_v19  ;;  %v217_v47 = vperm.slane %v213_v45, 0 }
 0x1aa   :  { %v218_v48 = vadd.f32 %v217_v47, %v216_v46 }
 0x1ac   :  { %v219_v49 = vmax.f32 %v218_v48, 0.0 }
 0x1ae   :  { %220 = vst [vmem:[#allocation8] sm:$0xff] %v219_v49 }
 0x1af   :  { %231 = dma.vmem_to_hbm [thread:$0]  %s227_s12, 128, %s229_s15, [#allocation4]  }
 0x1b0   :  { %352 = dma.done.wait [#allocation4], 128  }
 0x1b1   :  { %353 = vsyncadd [#allocation4], 4294967168 }
 0x1b2   :  { %236 = vsyncpa [#allocation3], 1 }
 0x1b3   :  { %237 = vsyncpa [#allocation6], 1 }
 0x1b4   :  { %238 = vsyncpa [#allocation4], 1 }

</bundles_post_ra>
